<compile_context>
chip_gen: v6e
topology: v6e:2x2x1
jax: 0.10.0
libtpu: 0.0.40
codegen_flags: <defaults>
</compile_context>

<pallas_src>
import functools

import jax
import jax.numpy as jnp
from jax.experimental import pallas as pl
from jax.experimental.pallas import tpu as pltpu

SCALE = 255.0 / 1.0  # same constant as the PyTorch script: scale = 255 / 1.0

LANE = 128      # TPU lane width (last dim of a vreg)
SUBLANE = 8     # TPU sublane count for 32-bit dtypes

TARGET_BLOCK_F32_BYTES = 4 * 1024 * 1024   # ~4 MiB of f32 compute per block
MIN_BLOCK_F32_BYTES = 1 * 1024 * 1024      # never shrink blocks below ~1 MiB
MIN_GRID_STEPS = 8                         # >= 4 blocks per TC on 2-core v7x
VMEM_LIMIT_BYTES = 32 * 1024 * 1024        # safe on v5e/v6e (128 MiB) & v7x (64 MiB)


def _round_up(a, b):
    return ((a + b - 1) // b) * b


def _fake_quantize_kernel(x_ref, o_ref, *, inv_scale, scale):
    # Upcast to f32 so round/clip happen in full precision (matches PyTorch
    # for f32; for bf16 inputs this is deliberately higher precision).
    x = x_ref[...].astype(jnp.float32)
    # torch.round and jnp.round are both round-half-to-even -> semantics match.
    x_q = jnp.clip(jnp.round(x * inv_scale), -128.0, 127.0)
    o_ref[...] = (x_q * scale).astype(o_ref.dtype)


def _choose_tile_rows(rows, itemsize):
    """Pick a lane-dense block height for a (rows, 128) slab."""
    sub_mult = SUBLANE * max(1, 4 // itemsize)         # 8 f32 / 16 bf16 / 32 int8
    target_rows = max(sub_mult, TARGET_BLOCK_F32_BYTES // (LANE * 4))
    min_rows = max(sub_mult, MIN_BLOCK_F32_BYTES // (LANE * 4))
    if rows <= min_rows:
        # Small slab: a single block whose shape equals the full array extent
        # (always a legal BlockSpec, even when rows < 8).
        return rows
    # Cap at the byte target, but split into >= MIN_GRID_STEPS blocks whenever
    # that still leaves >= MIN_BLOCK_F32_BYTES per block, so both v7x
    # TensorCores get several blocks and the DMA pipeline stays full per core.
    split_rows = _round_up(pl.cdiv(rows, MIN_GRID_STEPS), sub_mult)
    tile_rows = min(target_rows, max(min_rows, split_rows))
    return min(tile_rows, _round_up(rows, sub_mult))


def _fake_quantize_slab(slab, scale):
    """Run the Pallas kernel over a (rows, 128) slab."""
    rows, lanes = slab.shape
    assert lanes == LANE
    itemsize = jnp.dtype(slab.dtype).itemsize
    tile_rows = _choose_tile_rows(rows, itemsize)
    grid = (pl.cdiv(rows, tile_rows),)  # ragged last block handled by Pallas

    kernel = functools.partial(
        _fake_quantize_kernel, inv_scale=1.0 / float(scale), scale=float(scale))

    return pl.pallas_call(
        kernel,
        out_shape=jax.ShapeDtypeStruct((rows, LANE), slab.dtype),
        grid_spec=pltpu.PrefetchScalarGridSpec(
            num_scalar_prefetch=0,
            grid=grid,
            in_specs=[pl.BlockSpec((tile_rows, LANE), lambda i: (i, 0))],
            out_specs=pl.BlockSpec((tile_rows, LANE), lambda i: (i, 0)),
        ),
        compiler_params=pltpu.CompilerParams(
            dimension_semantics=("parallel",),
            vmem_limit_bytes=VMEM_LIMIT_BYTES,
        ),
        cost_estimate=pl.CostEstimate(
            flops=5 * rows * LANE,
            transcendentals=0,
            bytes_accessed=2 * rows * LANE * itemsize,
        ),
    )(slab)


def _fake_quantize_jnp(x, scale):
    """Tiny-tail / sub-vreg fallback (pure jnp, fuses under jit)."""
    inv_scale = 1.0 / float(scale)
    xf = x.astype(jnp.float32)
    return (jnp.clip(jnp.round(xf * inv_scale), -128.0, 127.0)
            * float(scale)).astype(x.dtype)


@functools.partial(jax.jit, static_argnames=("scale",))
def fake_quantize(x, scale=SCALE):
    """Elementwise fake-quantization of an arbitrary-shape float tensor."""
    n = x.size
    if n == 0:
        return x
    flat = x.reshape(-1)          # metadata-only under jit for contiguous input
    rem = n % LANE

    if rem == 0:                  # common CNN case: no pad, no slice, no copy
        out = _fake_quantize_slab(flat.reshape(-1, LANE), scale)
        return out.reshape(x.shape)

    n_bulk = n - rem
    if n_bulk == 0:
        # Smaller than one lane-row: a kernel launch would be pure overhead.
        return _fake_quantize_jnp(x, scale)

    # Ragged tail: kernel over the 128-divisible bulk, plain jnp over the
    # (<128-element) tail, then stitch.  Avoids the full-array pad and the
    # full-array slice of the previous version (each an extra HBM pass).
    bulk_out = _fake_quantize_slab(flat[:n_bulk].reshape(-1, LANE), scale)
    tail_out = _fake_quantize_jnp(flat[n_bulk:], scale)
    out = jnp.concatenate([bulk_out.reshape(-1), tail_out])
    return out.reshape(x.shape)


def fake_quantize_ref(x, scale=SCALE):
    """Pure-JAX reference mirroring the PyTorch forward.

    Uses the same multiply-by-reciprocal formulation as the kernel so the
    comparison is exact (divide vs. reciprocal-multiply can flip round() by
    one quantization step at exact .5 boundaries; module semantics identical).
    """
    inv_scale = 1.0 / float(scale)
    xf = x.astype(jnp.float32)
    return (jnp.clip(jnp.round(xf * inv_scale), -128.0, 127.0)
            * float(scale)).astype(x.dtype)


if __name__ == "__main__":
    key = jax.random.PRNGKey(0)
    # Small NCHW input consistent with the surrounding quantized-CNN script.
    x = jax.random.normal(key, (2, 4, 16, 16), dtype=jnp.float32) * 300.0

    y = jax.block_until_ready(fake_quantize(x))
    y_ref = fake_quantize_ref(x)
    assert y.shape == x.shape and y.dtype == x.dtype
    assert jnp.allclose(y, y_ref, atol=1e-4, rtol=1e-5), "mismatch vs reference"

    # Ragged / tiny shapes exercise the bulk+tail path and full-extent blocks.
    for i, shape in enumerate([(3, 43), (130,), (5,)]):
        xi = jax.random.normal(jax.random.PRNGKey(i + 1), shape,
                               dtype=jnp.float32) * 300.0
        yi = jax.block_until_ready(fake_quantize(xi))
        assert yi.shape == xi.shape and yi.dtype == xi.dtype
        assert jnp.allclose(yi, fake_quantize_ref(xi), atol=1e-4, rtol=1e-5), shape

    # bf16 path (dtype-aware sublane rounding; compute upcast to f32 in-kernel).
    xb = (jax.random.normal(jax.random.PRNGKey(7), (16, 128)) * 300.0
          ).astype(jnp.bfloat16)
    yb = jax.block_until_ready(fake_quantize(xb))
    assert yb.shape == xb.shape and yb.dtype == jnp.bfloat16
    assert jnp.allclose(yb.astype(jnp.float32),
                        fake_quantize_ref(xb).astype(jnp.float32),
                        atol=2.0, rtol=1e-2)

    print("KERNEL_OK")
</pallas_src>

<mosaic_0001>
module attributes {stable_mosaic.version = 11 : i64} {
  func.func @_fake_quantize_kernel(%arg0: i32, %arg1: memref<16x128xf32, #tpu.memory_space<vmem>>, %arg2: memref<16x128xf32, #tpu.memory_space<vmem>>) attributes {dimension_semantics = [#tpu.dimension_semantics<parallel>], iteration_bounds = array<i64: 1>, scalar_prefetch = 0 : i64, scratch_operands = 0 : i64, tpu.core_type = #tpu.core_type<tc>, window_params = [{transform_indices = @transform_0, window_bounds = array<i64: 16, 128>}, {transform_indices = @transform_1, window_bounds = array<i64: 16, 128>}]} {
    %c0 = arith.constant 0 : index
    %c0_0 = arith.constant 0 : index
    %0 = vector.load %arg1[%c0, %c0_0] : memref<16x128xf32, #tpu.memory_space<vmem>>, vector<16x128xf32>
    %cst = arith.constant 0.00392156886 : f32
    %1 = vector.broadcast %cst : f32 to vector<16x128xf32>
    %2 = arith.mulf %0, %1 : vector<16x128xf32>
    %3 = math.roundeven %2 : vector<16x128xf32>
    %cst_1 = arith.constant -1.280000e+02 : f32
    %cst_2 = arith.constant 1.270000e+02 : f32
    %4 = vector.broadcast %cst_1 : f32 to vector<16x128xf32>
    %5 = arith.maximumf %4, %3 : vector<16x128xf32>
    %6 = vector.broadcast %cst_2 : f32 to vector<16x128xf32>
    %7 = arith.minimumf %6, %5 : vector<16x128xf32>
    %cst_3 = arith.constant 2.550000e+02 : f32
    %8 = vector.broadcast %cst_3 : f32 to vector<16x128xf32>
    %9 = arith.mulf %7, %8 : vector<16x128xf32>
    %c0_4 = arith.constant 0 : index
    %c0_5 = arith.constant 0 : index
    %10 = vector.load %arg2[%c0_4, %c0_5] : memref<16x128xf32, #tpu.memory_space<vmem>>, vector<16x128xf32>
    tpu.vector_store %arg2[%c0_4, %c0_5], %9 {strides = array<i32>} : memref<16x128xf32, #tpu.memory_space<vmem>>, vector<16x128xf32>,
    return
  }
  func.func @transform_0(%arg0: i32) -> (i32, i32) {
    %c0_i32 = arith.constant 0 : i32
    %c0_i32_0 = arith.constant 0 : i32
    return %arg0, %c0_i32 : i32, i32
  }
  func.func @transform_1(%arg0: i32) -> (i32, i32) {
    %c0_i32 = arith.constant 0 : i32
    %c0_i32_0 = arith.constant 0 : i32
    return %arg0, %c0_i32 : i32, i32
  }
}

</mosaic_0001>

<bundles_post_ra>
// kernel: fake_quantize.1
= control target key start
LH: loop header
LB: loop body
LE: loop exit
PB: predicated region body
PF: predicated region fallthrough
CT: control target
= control target key end

     0   :  { %s64_s0 = inlined_call_operand.vmem [shape: f32[16,128], index: 0, kind: input, shape index: {}]   ;;  %s65_s1 = inlined_call_operand.vmem [shape: f32[16,128], index: 1, kind: output, shape index: {}]  }
   0x1   :  { %v8_v0 = vld [vmem:[%s64_s0] sm:$0xff]  ;;  %v9_v1 = vld [vmem:[%s64_s0 + $0x8] sm:$0xff] }
   0x2   :  { %v10_v2 = vmul.f32 0.003921569, %v8_v0  ;;  %v11_v3 = vmul.f32 0.003921569, %v9_v1 }
   0x4   :  { %v28_v4 = vcvt.f32.s32 %v10_v2  ;;  %v26_v5 = vand.u32 2147483647, %v10_v2  ;;  %v36_v6 = vcvt.f32.s32 %v11_v3  ;;  %v31_v8 = vand.u32 2147483648, %v10_v2 }
   0x5   :  { %v34_v9 = vand.u32 2147483647, %v11_v3  ;;  %v39_v11 = vand.u32 2147483648, %v11_v3 }
   0x6   :  { %v29_v7 = vcvt.s32.f32 %v28_v4  ;;  %v37_v10 = vcvt.s32.f32 %v36_v6  ;;  %vm27_vm0 = vcmp.lt.f32.partialorder %v26_v5, 8388608.0 }
   0x7   :  { %vm35_vm1 = vcmp.lt.f32.partialorder %v34_v9, 8388608.0 }
   0x8   :  { %v30_v12 = vand.u32 2147483647, %v29_v7  ;;  %v38_v13 = vand.u32 2147483647, %v37_v10 }
   0xa   :  { %v32_v14 = vor.u32 %v31_v8, %v30_v12  ;;  %v40_v15 = vor.u32 %v39_v11, %v38_v13 }
   0xc   :  { %v33_v16 = vsel %vm27_vm0, %v32_v14, %v10_v2  ;;  %v41_v18 = vsel %vm35_vm1, %v40_v15, %v11_v3 }
   0xd   :  { %v14_v17 = vmax.f32 %v33_v16, -128.0  ;;  %v15_v19 = vmax.f32 %v41_v18, -128.0 }
   0xf   :  { %v16_v20 = vmin.f32 %v14_v17, 127.0  ;;  %v17_v21 = vmin.f32 %v15_v19, 127.0 }
  0x11   :  { %v18_v22 = vmul.f32 255.0, %v16_v20  ;;  %v19_v23 = vmul.f32 255.0, %v17_v21 }
  0x13   :  { %20 = vst [vmem:[%s65_s1] sm:$0xff] %v18_v22  ;;  %21 = vst [vmem:[%s65_s1 + $0x8] sm:$0xff] %v19_v23 }

</bundles_post_ra>
